<compile_context>
chip_gen: v5e
topology: v5e:2x2
jax: 0.10.0
libtpu: 0.0.40
codegen_flags: <defaults>
</compile_context>

<pallas_src>
import numpy as np
import jax
import jax.numpy as jnp
from jax.experimental import pallas as pl
from jax.experimental.pallas import tpu as pltpu

POSITION_DIM = 6
EMBEDDING_DIM = 16
HIDDEN_DIM = 32            # fc1 output width
TIME_EMB_DIM = 32          # TimestepEmbedder embedding_dim
HALF_DIM = TIME_EMB_DIM // 2
MAX_POSITIONS = 1000.0

LANE = 128                 # TPU lane width
MAX_TILE_B = 32768         # batch-tile cap (multiple of 128); sweepable 16K-64K

# Per-batch-column VMEM footprint (f32, batch-on-lanes):
#   I/O double-buffered: 2 * (8 + 8 + 8) sublanes * 4 B = 192 B
#   live intermediates (x, ang, sin, cos, 3 dot results, h, out) worst case ~650 B
# 2048 B/column gives ~3x headroom for compiler temporaries.
_VMEM_BYTES_PER_COL = 2048
_VMEM_LIMIT_CAP = 48 * 1024 * 1024     # keeps double-buffering alive under v7x's 64 MiB
_VMEM_LIMIT_FLOOR = 24 * 1024 * 1024   # above v5e's 16 MiB default scoped limit


def _cdiv(a, b):
    return -(-a // b)


def _round_up(x, m):
    return _cdiv(x, m) * m


def _choose_tiling(batch):
    """Pick (n_steps, tile_b): tile_b multiple of 128, padding waste <= n_steps*128,
    and >=2 (even) grid steps for non-trivial batches so v7x's dual TCs both work."""
    n = max(1, _cdiv(batch, MAX_TILE_B))
    if batch >= 2 * LANE:
        n = max(n, 2)
    if n > 1 and (n % 2):
        n += 1
    tile_b = _round_up(_cdiv(batch, n), LANE)
    return n, tile_b


def _nlinear_kernel(pos_ref, t_ref, bias_ref,
                    wp_ref, w1_ref, wsin_ref, wcos_ref, w2_ref,
                    out_ref):
    """Batch-on-lanes layout: every activation is (features, TILE_B)."""
    # Packed small operands: columns are [bp | b1 | b2 | freq], zero-padded to 32 rows.
    bp = bias_ref[0:EMBEDDING_DIM, 0:1]                                # (16, 1)
    b1 = bias_ref[:, 1:2]                                              # (32, 1)
    b2 = bias_ref[0:POSITION_DIM, 2:3]                                 # (6, 1)
    freq = bias_ref[0:HALF_DIM, 3:4]                                   # (16, 1)

    # position_proj + ReLU : (16, 6) @ (6, TB) + (16, 1)
    x = jnp.dot(wp_ref[...], pos_ref[...], preferred_element_type=jnp.float32)
    x = jnp.maximum(x + bp, 0.0)                                       # (16, TB)

    # Sinusoidal timestep features (lane-dense).  The * MAX_POSITIONS lives on the
    # (1, TB) row before broadcast, so it is ~16 vreg ops/tile and keeps the module's
    # exact accumulation order.
    t_scaled = t_ref[...] * MAX_POSITIONS                              # (1, TB)
    ang = freq * t_scaled                                              # (16, TB)
    s = jnp.sin(ang)
    c = jnp.cos(ang)

    # fc1 with the timestep projection folded in (no concat; two (32,16) dots):
    #   h = relu(W1^T x + (Wt_sin@W1)^T sin + (Wt_cos@W1)^T cos + b1)
    h = (jnp.dot(w1_ref[...], x, preferred_element_type=jnp.float32)
         + jnp.dot(wsin_ref[...], s, preferred_element_type=jnp.float32)
         + jnp.dot(wcos_ref[...], c, preferred_element_type=jnp.float32)
         + b1)
    h = jnp.maximum(h, 0.0)                                            # (32, TB)

    # fc2 : (6, 32) @ (32, TB) + (6, 1)
    out_ref[...] = (jnp.dot(w2_ref[...], h, preferred_element_type=jnp.float32)
                    + b2)                                              # (6, TB)


def nlinear_forward_planar(pos_planar, t_row, kparams):
    """Planar (kernel-layout) entry point: pos_planar (6, B), t_row (1, B) -> (6, B).

    Consumers that can produce/consume the planar layout should call this directly and
    skip the transpose passes in `nlinear_forward` (review option (b))."""
    B = pos_planar.shape[1]
    n, tile_b = _choose_tiling(B)
    b_pad = n * tile_b
    if b_pad != B:
        pos_planar = jnp.pad(pos_planar, ((0, 0), (0, b_pad - B)))
        t_row = jnp.pad(t_row, ((0, 0), (0, b_pad - B)))

    vmem_limit = int(min(_VMEM_LIMIT_CAP,
                         max(_VMEM_LIMIT_FLOOR, tile_b * _VMEM_BYTES_PER_COL)))

    batch_spec = lambda r: pl.BlockSpec((r, tile_b), lambda i: (0, i))
    const_spec = lambda r, c: pl.BlockSpec((r, c), lambda i: (0, 0))

    out = pl.pallas_call(
        _nlinear_kernel,
        out_shape=jax.ShapeDtypeStruct((POSITION_DIM, b_pad), jnp.float32),
        grid=(n,),
        in_specs=[
            batch_spec(POSITION_DIM),                    # pos     (6, TB)
            batch_spec(1),                               # t       (1, TB)
            const_spec(HIDDEN_DIM, 4),                   # bias/freq pack (32, 4)
            const_spec(EMBEDDING_DIM, POSITION_DIM),     # Wp^T    (16, 6)
            const_spec(HIDDEN_DIM, EMBEDDING_DIM),       # W1^T    (32, 16)
            const_spec(HIDDEN_DIM, HALF_DIM),            # Wsin^T  (32, 16)
            const_spec(HIDDEN_DIM, HALF_DIM),            # Wcos^T  (32, 16)
            const_spec(POSITION_DIM, HIDDEN_DIM),        # W2^T    (6, 32)
        ],
        out_specs=batch_spec(POSITION_DIM),              # out     (6, TB)
        compiler_params=pltpu.CompilerParams(
            dimension_semantics=("parallel",),
            vmem_limit_bytes=vmem_limit,
        ),
    )(pos_planar, t_row,
      kparams["bias_pack"],
      kparams["wp_t"], kparams["w1_t"],
      kparams["wsin_t"], kparams["wcos_t"],
      kparams["w2_t"])

    return out[:, :B] if b_pad != B else out


def nlinear_forward(position_t, t, kparams):
    """position_t: (B, position_dim) float32, t: (B,) float32 -> (B, position_dim)."""
    orig_shape = position_t.shape
    B = orig_shape[0]
    pos = position_t.reshape(B, POSITION_DIM).astype(jnp.float32)
    t_row = t.reshape(1, B).astype(jnp.float32)          # free (no data permutation)
    out_planar = nlinear_forward_planar(pos.T, t_row, kparams)
    return out_planar.T.reshape(orig_shape)


def init_params(key):
    """Deterministic synthetic init mirroring the PyTorch module (weights kept as (in, out))."""
    ks = jax.random.split(key, 4)

    def lin(k, fan_in, fan_out):
        bound = 1.0 / np.sqrt(fan_in)
        kw, kb = jax.random.split(k)
        w = jax.random.uniform(kw, (fan_in, fan_out), jnp.float32, -bound, bound)
        b = jax.random.uniform(kb, (1, fan_out), jnp.float32, -bound, bound)
        return w, b

    wp, bp = lin(ks[0], POSITION_DIM, EMBEDDING_DIM)           # position_proj
    w1, b1 = lin(ks[1], EMBEDDING_DIM, HIDDEN_DIM)             # fc1 (Linear(16, 32))
    w2, b2 = lin(ks[2], HIDDEN_DIM, POSITION_DIM)              # fc2 (Linear(32, 6))

    # TimestepEmbedder.proj_out: Linear(32, 16, bias=False), stored transposed (32, 16)
    bound_t = 1.0 / np.sqrt(TIME_EMB_DIM)
    wt = jax.random.uniform(ks[3], (TIME_EMB_DIM, EMBEDDING_DIM), jnp.float32,
                            -bound_t, bound_t)

    # Fixed sinusoidal frequencies: exp(arange(half_dim) * -log(max_positions)/(half_dim-1))
    scale = np.log(MAX_POSITIONS) / (HALF_DIM - 1)
    freq = np.exp(np.arange(HALF_DIM, dtype=np.float32) * -scale).reshape(1, HALF_DIM)

    return {
        "wp": wp, "bp": bp,
        "w1": w1, "b1": b1,
        "w2": w2, "b2": b2,
        "wt_sin": wt[:HALF_DIM, :],   # applied to sin features
        "wt_cos": wt[HALF_DIM:, :],   # applied to cos features
        "freq": jnp.asarray(freq),
    }


def prepare_kernel_params(p):
    """Kernel-layout params: transposed for batch-on-lanes, proj_out folded into fc1,
    biases + frequencies packed into a single (32, 4) operand."""
    w1 = p["w1"]
    wsin_t = (p["wt_sin"] @ w1).T                       # (32, 16)
    wcos_t = (p["wt_cos"] @ w1).T                       # (32, 16)

    bias_pack = jnp.zeros((HIDDEN_DIM, 4), jnp.float32)
    bias_pack = bias_pack.at[:EMBEDDING_DIM, 0].set(p["bp"].reshape(-1))
    bias_pack = bias_pack.at[:, 1].set(p["b1"].reshape(-1))
    bias_pack = bias_pack.at[:POSITION_DIM, 2].set(p["b2"].reshape(-1))
    bias_pack = bias_pack.at[:HALF_DIM, 3].set(p["freq"].reshape(-1))

    return {
        "wp_t": p["wp"].T,                              # (16, 6)
        "w1_t": w1.T,                                   # (32, 16)
        "wsin_t": wsin_t,                               # (32, 16)
        "wcos_t": wcos_t,                               # (32, 16)
        "w2_t": p["w2"].T,                              # (6, 32)
        "bias_pack": bias_pack,                         # (32, 4) [bp | b1 | b2 | freq]
    }


def _reference_forward(position_t, t, p):
    """Pure-JAX reference mirroring the PyTorch module."""
    B = position_t.shape[0]
    x = position_t.reshape(B, POSITION_DIM).astype(jnp.float32)
    x = jnp.maximum(x @ p["wp"] + p["bp"], 0.0)
    ang = (t.reshape(B, 1) * MAX_POSITIONS) * p["freq"]
    temb = jnp.sin(ang) @ p["wt_sin"] + jnp.cos(ang) @ p["wt_cos"]
    h = jnp.maximum((x + temb) @ p["w1"] + p["b1"], 0.0)
    out = h @ p["w2"] + p["b2"]
    return out.reshape(position_t.shape)


if __name__ == "__main__":
    key = jax.random.PRNGKey(0)
    k_pos, k_t, k_param, k_pos2, k_t2 = jax.random.split(key, 5)

    params = init_params(k_param)
    kparams = prepare_kernel_params(params)

    fwd = jax.jit(nlinear_forward)

    # Small shape consistent with the module.
    B = 8
    position_t = jax.random.normal(k_pos, (B, POSITION_DIM), jnp.float32)
    t = jax.random.uniform(k_t, (B,), jnp.float32)

    pred_score = fwd(position_t, t, kparams)
    jax.block_until_ready(pred_score)
    ref = _reference_forward(position_t, t, params)
    np.testing.assert_allclose(np.asarray(pred_score), np.asarray(ref),
                               rtol=1e-5, atol=1e-4)

    # Larger batch exercises the multi-step grid (>=2 steps) + minimal-padding path.
    B2 = 1000
    position_t2 = jax.random.normal(k_pos2, (B2, POSITION_DIM), jnp.float32)
    t2 = jax.random.uniform(k_t2, (B2,), jnp.float32)
    pred2 = fwd(position_t2, t2, kparams)
    jax.block_until_ready(pred2)
    ref2 = _reference_forward(position_t2, t2, params)
    np.testing.assert_allclose(np.asarray(pred2), np.asarray(ref2),
                               rtol=1e-5, atol=1e-4)

    print("KERNEL_OK")
</pallas_src>

<mosaic_0001>
module attributes {stable_mosaic.version = 11 : i64} {
  func.func @_nlinear_kernel(%arg0: i32, %arg1: memref<6x128xf32, #tpu.memory_space<vmem>>, %arg2: memref<1x128xf32, #tpu.memory_space<vmem>>, %arg3: memref<32x4xf32, #tpu.memory_space<vmem>>, %arg4: memref<16x6xf32, #tpu.memory_space<vmem>>, %arg5: memref<32x16xf32, #tpu.memory_space<vmem>>, %arg6: memref<32x16xf32, #tpu.memory_space<vmem>>, %arg7: memref<32x16xf32, #tpu.memory_space<vmem>>, %arg8: memref<6x32xf32, #tpu.memory_space<vmem>>, %arg9: memref<6x128xf32, #tpu.memory_space<vmem>>) attributes {dimension_semantics = [#tpu.dimension_semantics<parallel>], iteration_bounds = array<i64: 1>, scalar_prefetch = 0 : i64, scratch_operands = 0 : i64, tpu.core_type = #tpu.core_type<tc>, window_params = [{transform_indices = @transform_0, window_bounds = array<i64: 6, 128>}, {transform_indices = @transform_1, window_bounds = array<i64: 1, 128>}, {pipeline_mode = #tpu.pipeline_mode<synchronous>, transform_indices = @transform_2, window_bounds = array<i64: 32, 4>}, {pipeline_mode = #tpu.pipeline_mode<synchronous>, transform_indices = @transform_3, window_bounds = array<i64: 16, 6>}, {pipeline_mode = #tpu.pipeline_mode<synchronous>, transform_indices = @transform_4, window_bounds = array<i64: 32, 16>}, {pipeline_mode = #tpu.pipeline_mode<synchronous>, transform_indices = @transform_5, window_bounds = array<i64: 32, 16>}, {pipeline_mode = #tpu.pipeline_mode<synchronous>, transform_indices = @transform_6, window_bounds = array<i64: 32, 16>}, {pipeline_mode = #tpu.pipeline_mode<synchronous>, transform_indices = @transform_7, window_bounds = array<i64: 6, 32>}, {transform_indices = @transform_8, window_bounds = array<i64: 6, 128>}]} {
    %c0 = arith.constant 0 : index
    %c0_0 = arith.constant 0 : index
    %0 = vector.load %arg3[%c0, %c0_0] : memref<32x4xf32, #tpu.memory_space<vmem>>, vector<16x1xf32>
    %c0_1 = arith.constant 0 : index
    %c1 = arith.constant 1 : index
    %1 = vector.load %arg3[%c0_1, %c1] : memref<32x4xf32, #tpu.memory_space<vmem>>, vector<32x1xf32>
    %c0_2 = arith.constant 0 : index
    %c2 = arith.constant 2 : index
    %2 = vector.load %arg3[%c0_2, %c2] : memref<32x4xf32, #tpu.memory_space<vmem>>, vector<6x1xf32>
    %c0_3 = arith.constant 0 : index
    %c3 = arith.constant 3 : index
    %3 = vector.load %arg3[%c0_3, %c3] : memref<32x4xf32, #tpu.memory_space<vmem>>, vector<16x1xf32>
    %c0_4 = arith.constant 0 : index
    %c0_5 = arith.constant 0 : index
    %4 = vector.load %arg4[%c0_4, %c0_5] : memref<16x6xf32, #tpu.memory_space<vmem>>, vector<16x6xf32>
    %c0_6 = arith.constant 0 : index
    %c0_7 = arith.constant 0 : index
    %5 = vector.load %arg1[%c0_6, %c0_7] : memref<6x128xf32, #tpu.memory_space<vmem>>, vector<6x128xf32>
    %cst = arith.constant dense<0.000000e+00> : vector<16x128xf32>
    %6 = tpu.matmul %4, %5, %cst {dimension_numbers = #tpu.dot_dimension_numbers<[1], [0], [0], [1], [0, 0, 1, 1], [], []>} : vector<16x6xf32>, vector<6x128xf32>, vector<16x128xf32> -> vector<16x128xf32>
    %7 = vector.broadcast %0 : vector<16x1xf32> to vector<16x128xf32>
    %8 = arith.addf %6, %7 : vector<16x128xf32>
    %cst_8 = arith.constant 0.000000e+00 : f32
    %9 = vector.broadcast %cst_8 : f32 to vector<16x128xf32>
    %10 = arith.maximumf %8, %9 : vector<16x128xf32>
    %c0_9 = arith.constant 0 : index
    %c0_10 = arith.constant 0 : index
    %11 = vector.load %arg2[%c0_9, %c0_10] : memref<1x128xf32, #tpu.memory_space<vmem>>, vector<1x128xf32>
    %cst_11 = arith.constant 1.000000e+03 : f32
    %12 = vector.broadcast %cst_11 : f32 to vector<1x128xf32>
    %13 = arith.mulf %11, %12 : vector<1x128xf32>
    %14 = vector.broadcast %3 : vector<16x1xf32> to vector<16x128xf32>
    %15 = vector.broadcast %13 : vector<1x128xf32> to vector<16x128xf32>
    %16 = arith.mulf %14, %15 : vector<16x128xf32>
    %17 = math.sin %16 : vector<16x128xf32>
    %18 = math.cos %16 : vector<16x128xf32>
    %c0_12 = arith.constant 0 : index
    %c0_13 = arith.constant 0 : index
    %19 = vector.load %arg5[%c0_12, %c0_13] : memref<32x16xf32, #tpu.memory_space<vmem>>, vector<32x16xf32>
    %cst_14 = arith.constant dense<0.000000e+00> : vector<32x128xf32>
    %20 = tpu.matmul %19, %10, %cst_14 {dimension_numbers = #tpu.dot_dimension_numbers<[1], [0], [0], [1], [0, 0, 1, 1], [], []>} : vector<32x16xf32>, vector<16x128xf32>, vector<32x128xf32> -> vector<32x128xf32>
    %c0_15 = arith.constant 0 : index
    %c0_16 = arith.constant 0 : index
    %21 = vector.load %arg6[%c0_15, %c0_16] : memref<32x16xf32, #tpu.memory_space<vmem>>, vector<32x16xf32>
    %cst_17 = arith.constant dense<0.000000e+00> : vector<32x128xf32>
    %22 = tpu.matmul %21, %17, %cst_17 {dimension_numbers = #tpu.dot_dimension_numbers<[1], [0], [0], [1], [0, 0, 1, 1], [], []>} : vector<32x16xf32>, vector<16x128xf32>, vector<32x128xf32> -> vector<32x128xf32>
    %23 = arith.addf %20, %22 : vector<32x128xf32>
    %c0_18 = arith.constant 0 : index
    %c0_19 = arith.constant 0 : index
    %24 = vector.load %arg7[%c0_18, %c0_19] : memref<32x16xf32, #tpu.memory_space<vmem>>, vector<32x16xf32>
    %cst_20 = arith.constant dense<0.000000e+00> : vector<32x128xf32>
    %25 = tpu.matmul %24, %18, %cst_20 {dimension_numbers = #tpu.dot_dimension_numbers<[1], [0], [0], [1], [0, 0, 1, 1], [], []>} : vector<32x16xf32>, vector<16x128xf32>, vector<32x128xf32> -> vector<32x128xf32>
    %26 = arith.addf %23, %25 : vector<32x128xf32>
    %27 = vector.broadcast %1 : vector<32x1xf32> to vector<32x128xf32>
    %28 = arith.addf %26, %27 : vector<32x128xf32>
    %cst_21 = arith.constant 0.000000e+00 : f32
    %29 = vector.broadcast %cst_21 : f32 to vector<32x128xf32>
    %30 = arith.maximumf %28, %29 : vector<32x128xf32>
    %c0_22 = arith.constant 0 : index
    %c0_23 = arith.constant 0 : index
    %31 = vector.load %arg8[%c0_22, %c0_23] : memref<6x32xf32, #tpu.memory_space<vmem>>, vector<6x32xf32>
    %cst_24 = arith.constant dense<0.000000e+00> : vector<6x128xf32>
    %32 = tpu.matmul %31, %30, %cst_24 {dimension_numbers = #tpu.dot_dimension_numbers<[1], [0], [0], [1], [0, 0, 1, 1], [], []>} : vector<6x32xf32>, vector<32x128xf32>, vector<6x128xf32> -> vector<6x128xf32>
    %33 = vector.broadcast %2 : vector<6x1xf32> to vector<6x128xf32>
    %34 = arith.addf %32, %33 : vector<6x128xf32>
    %c0_25 = arith.constant 0 : index
    %c0_26 = arith.constant 0 : index
    %35 = vector.load %arg9[%c0_25, %c0_26] : memref<6x128xf32, #tpu.memory_space<vmem>>, vector<6x128xf32>
    tpu.vector_store %arg9[%c0_25, %c0_26], %34 {strides = array<i32>} : memref<6x128xf32, #tpu.memory_space<vmem>>, vector<6x128xf32>,
    return
  }
  func.func @transform_0(%arg0: i32) -> (i32, i32) {
    %c0_i32 = arith.constant 0 : i32
    %c0_i32_0 = arith.constant 0 : i32
    return %c0_i32, %arg0 : i32, i32
  }
  func.func @transform_1(%arg0: i32) -> (i32, i32) {
    %c0_i32 = arith.constant 0 : i32
    %c0_i32_0 = arith.constant 0 : i32
    return %c0_i32, %arg0 : i32, i32
  }
  func.func @transform_2(%arg0: i32) -> (i32, i32) {
    %c0_i32 = arith.constant 0 : i32
    %c0_i32_0 = arith.constant 0 : i32
    %c0_i32_1 = arith.constant 0 : i32
    return %c0_i32, %c0_i32_0 : i32, i32
  }
  func.func @transform_3(%arg0: i32) -> (i32, i32) {
    %c0_i32 = arith.constant 0 : i32
    %c0_i32_0 = arith.constant 0 : i32
    %c0_i32_1 = arith.constant 0 : i32
    return %c0_i32, %c0_i32_0 : i32, i32
  }
  func.func @transform_4(%arg0: i32) -> (i32, i32) {
    %c0_i32 = arith.constant 0 : i32
    %c0_i32_0 = arith.constant 0 : i32
    %c0_i32_1 = arith.constant 0 : i32
    return %c0_i32, %c0_i32_0 : i32, i32
  }
  func.func @transform_5(%arg0: i32) -> (i32, i32) {
    %c0_i32 = arith.constant 0 : i32
    %c0_i32_0 = arith.constant 0 : i32
    %c0_i32_1 = arith.constant 0 : i32
    return %c0_i32, %c0_i32_0 : i32, i32
  }
  func.func @transform_6(%arg0: i32) -> (i32, i32) {
    %c0_i32 = arith.constant 0 : i32
    %c0_i32_0 = arith.constant 0 : i32
    %c0_i32_1 = arith.constant 0 : i32
    return %c0_i32, %c0_i32_0 : i32, i32
  }
  func.func @transform_7(%arg0: i32) -> (i32, i32) {
    %c0_i32 = arith.constant 0 : i32
    %c0_i32_0 = arith.constant 0 : i32
    %c0_i32_1 = arith.constant 0 : i32
    return %c0_i32, %c0_i32_0 : i32, i32
  }
  func.func @transform_8(%arg0: i32) -> (i32, i32) {
    %c0_i32 = arith.constant 0 : i32
    %c0_i32_0 = arith.constant 0 : i32
    return %c0_i32, %arg0 : i32, i32
  }
}

</mosaic_0001>

<bundles_post_ra>
// kernel: nlinear_forward.1
= control target key start
LH: loop header
LB: loop body
LE: loop exit
PB: predicated region body
PF: predicated region fallthrough
CT: control target
= control target key end

     0   :  { %vm54_vm0 = vcmask 1045504   ;;  %vm47_vm1 = vcmask 48128   ;;  %v962_v0 = vmov 3   ;;  %v963_v3 = vmov 0   ;;  %s1304_s2 = inlined_call_operand.vmem [shape: f32[32,4], index: 2, kind: input, shape index: {}]   ;;  %s1305_s0 = inlined_call_operand.vmem [shape: f32[6,128], index: 0, kind: input, shape index: {}]   ;;  %s1306_s3 = inlined_call_operand.vmem [shape: f32[16,6], index: 3, kind: input, shape index: {}]   ;;  %s1307_s1 = inlined_call_operand.vmem [shape: f32[1,128], index: 1, kind: input, shape index: {}]   ;;  %s1308_s4 = inlined_call_operand.vmem [shape: f32[32,16], index: 4, kind: input, shape index: {}]   ;;  %s1309_s6 = inlined_call_operand.vmem [shape: f32[32,16], index: 6, kind: input, shape index: {}]   ;;  %s1310_s5 = inlined_call_operand.vmem [shape: f32[32,16], index: 5, kind: input, shape index: {}]   ;;  %s1311_s7 = inlined_call_operand.vmem [shape: f32[6,32], index: 7, kind: input, shape index: {}]   ;;  %s1312_s8 = inlined_call_operand.vmem [shape: f32[6,128], index: 8, kind: output, shape index: {}]  }
   0x1   :  { %955 = vset.pattern.permute.xlu0 %v962_v0  ;;  %v1020_v1 = vld [vmem:[%s1304_s2 + $0x8] sm:$0xff]  ;;  %v36_v2 = vld [vmem:[%s1305_s0] sm:$0x3f]  ;;  %956 = vset.pattern.permute.xlu1 %v963_v3  ;;  %v964_v33 = vmov 2102212464  }
   0x2   :  { %90 = vperm.xlu0 %955, %v1020_v1   ;;  %917 = vmatpush.msk.msra.mxu0 %vm54_vm0, %v36_v2  ;;  %v34_v4 = vld [vmem:[%s1306_s3] sm:$0xff]  ;;  %v35_v6 = vld [vmem:[%s1306_s3 + $0x8] sm:$0xff]  ;;  %v965_v35 = vmov 920167782   ;;  %v966_v39 = vmov 683565275  }
   0x3   :  { %918 = vmatmul.msk.f32.vlgmr.msra.gmra.mxu0 %vm47_vm1, %v34_v4  ;;  %44 = vperm.xlu1 %956, %v1020_v1   ;;  %v1034_v5 = vld [vmem:[%s1304_s2] sm:$0xff]  ;;  %v967_v42 = vmov 1326507024   ;;  %v968_v44 = vmov 2475754826  }
   0x4   :  { %v83_v7 = vld [vmem:[%s1307_s1] sm:$0x1]  ;;  %v969_v48 = vmov 2131351028  }
   0x5   :  { %v84_v8 = vmul.f32 1000.0, %v83_v7 }
   0x7   :  { %v94_v9 = vperm.slane %v84_v8, 0 }
   0xa   :  { %86 = vperm.xlu0 %955, %v1034_v5  }
   0xb   :  { %919 = vmatmul.msk.f32.gmra.mxu0 %vm47_vm1, %v35_v6  ;;  %39 = vperm.xlu1 %956, %v1034_v5  }
  0x74   :  { %v91_v10 = vpop.permute.xlu0 %90 }
  0x75   :  { %v1044_v11 = vmul.f32 %v94_v9, %v91_v10  ;;  %v45_v16 = vpop.permute.xlu1 %44 }
  0x77   :  { %v256_v12 = vand.u32 2139095040, %v1044_v11  ;;  %v253_v13 = vand.u32 2147483647, %v1044_v11 }
  0x79   :  { %v257_v14 = vshrl.u32 %v256_v12, 23  ;;  %v260_v15 = vand.u32 8388607, %v253_v13 }
  0x7b   :  { %v923_v17 = vadd.s32 4294967169, %v257_v14  ;;  %v261_v18 = vor.u32 8388608, %v260_v15 }
  0x7c   :  { %v87_v19 = vpop.permute.xlu0 %86 }
  0x7d   :  { %v263_v20 = vadd.s32 1, %v923_v17  ;;  %v1050_v21 = vmul.f32 %v94_v9, %v87_v19  ;;  %v1052_v22 = vshll.u32 %v261_v18, 8  ;;  %v40_v38 = vpop.permute.xlu1 %39 }
  0x7f   :  { %vm264_vm2 = vcmp.gt.s32.totalorder %v263_v20, 0  ;;  %v101_v23 = vand.u32 2139095040, %v1050_v21  ;;  %v1056_v28 = vand.u32 65535, %v1052_v22  ;;  %v1061_v31 = vshrl.u32 %v1052_v22, 16 }
  0x80   :  { %v265_v24 = vsel %vm264_vm2, %v263_v20, 0  ;;  %v75_v25 = vpop.f32.mrf.mxu0  ;;  %v98_v32 = vand.u32 2147483647, %v1050_v21 }
  0x81   :  { %v267_v26 = vand.u32 31, %v265_v24  ;;  %v102_v27 = vshrl.u32 %v101_v23, 23  ;;  %v1058_v29 = vshrl.u32 %v265_v24, 5  ;;  %v76_v54 = vadd.f32 %v75_v25, %v40_v38 }
  0x82   :  { %v1076_v62 = vand.u32 8388607, %v98_v32 }
  0x83   :  { %v268_v30 = vsub.s32 32, %v267_v26  ;;  %v279_v34 = vshll.u32 %v964_v33, %v267_v26  ;;  %v282_v36 = vshll.u32 %v965_v35, %v267_v26  ;;  %v920_v37 = vadd.s32 4294967169, %v102_v27 }
  0x84   :  { %v270_v40 = vshll.u32 %v966_v39, %v267_v26  ;;  %v273_v46 = vshll.u32 %v968_v44, %v267_v26  ;;  %v276_v50 = vshll.u32 %v969_v48, %v267_v26  ;;  %vm288_vm3 = vcmp.lt.s32.totalorder %v1058_v29, 4 }
  0x85   :  { %v280_v41 = vshrl.u32 %v965_v35, %v268_v30  ;;  %v283_v43 = vshrl.u32 %v967_v42, %v268_v30  ;;  %v271_v45 = vshrl.u32 %v968_v44, %v268_v30  ;;  %v108_v47 = vadd.s32 1, %v920_v37 }
  0x86   :  { %v274_v49 = vshrl.u32 %v969_v48, %v268_v30  ;;  %v277_v51 = vshrl.u32 %v964_v33, %v268_v30  ;;  %vm285_vm5 = vcmp.lt.s32.totalorder %v1058_v29, 1  ;;  %vm287_vm6 = vcmp.lt.s32.totalorder %v1058_v29, 3 }
  0x87   :  { %v281_v52 = vor.u32 %v280_v41, %v279_v34  ;;  %v284_v53 = vor.u32 %v283_v43, %v282_v36  ;;  %v272_v55 = vor.u32 %v271_v45, %v270_v40  ;;  %vm109_vm4 = vcmp.gt.s32.totalorder %v108_v47, 0 }
  0x88   :  { %v78_v56 = vpop.f32.mrf.mxu0  ;;  %v275_v57 = vor.u32 %v274_v49, %v273_v46  ;;  %v278_v58 = vor.u32 %v277_v51, %v276_v50  ;;  %v110_v60 = vsel %vm109_vm4, %v108_v47, 0  ;;  %v81_v2 = vmax.f32 %v76_v54, 0.0 }
  0x89   :  { %v294_v59 = vsel %vm288_vm3, %v281_v52, 920167782  ;;  %v79_v61 = vadd.f32 %v78_v56, %v45_v16  ;;  %v298_v63 = vsel %vm288_vm3, %v284_v53, 1326507024  ;;  %v1080_v0 = vand.u32 31, %v110_v60 }
  0x8a   :  { %v293_v6 = vsel %vm285_vm5, %v272_v55, %v275_v57  ;;  %v295_v7 = vsel %vm287_vm6, %v278_v58, %v294_v59  ;;  %v1088_v8 = vshrl.u32 %v110_v60, 5  ;;  %v269_v10 = vshrl.u32 %v966_v39, %v268_v30 }
  0x8b   :  { %v82_v4 = vmax.f32 %v79_v61, 0.0  ;;  %v1091_v9 = vsub.s32 32, %v1080_v0  ;;  %vm286_vm7 = vcmp.lt.s32.totalorder %v1058_v29, 2  ;;  %v124_v12 = vshll.u32 %v964_v33, %v1080_v0 }
  0x8c   :  { %v296_v14 = vsel %vm286_vm7, %v293_v6, %v295_v7  ;;  %v297_v15 = vsel %vm285_vm5, %v275_v57, %v278_v58  ;;  %v299_v16 = vsel %vm287_vm6, %v281_v52, %v298_v63  ;;  %v127_v18 = vshll.u32 %v965_v35, %v1080_v0 }
  0x8d   :  { %792 = vmatpush.msra.mxu2 %v82_v4  ;;  %v125_v17 = vshrl.u32 %v965_v35, %v1091_v9  ;;  %v128_v19 = vshrl.u32 %v967_v42, %v1091_v9  ;;  %v300_v20 = vsel %vm286_vm7, %v297_v15, %v299_v16  ;;  %v290_v23 = vsel %vm288_vm3, %v278_v58, 2102212464 }
  0x8e   :  { %v304_v24 = vand.u32 65535, %v300_v20  ;;  %v305_v25 = vshrl.u32 %v300_v20, 16  ;;  %v327_v26 = vshrl.u32 %v296_v14, 16  ;;  %v326_v34 = vand.u32 65535, %v296_v14 }
  0x8f   :  { %793 = vmatpush.msra.mxu2 %v81_v2  ;;  %v126_v27 = vor.u32 %v125_v17, %v124_v12  ;;  %v129_v30 = vor.u32 %v128_v19, %v127_v18  ;;  %vm133_vm8 = vcmp.lt.s32.totalorder %v1088_v8, 4  ;;  %v289_v35 = vsel %vm285_vm5, %v269_v10, %v272_v55 }
  0x90   :  { %v307_v36 = vmul.u32 %v305_v25, %v1056_v28  ;;  %v308_v37 = vmul.u32 %v304_v24, %v1061_v31  ;;  %v291_v38 = vsel %vm287_vm6, %v275_v57, %v290_v23  ;;  %v306_v40 = vmul.u32 %v304_v24, %v1056_v28 }
  0x91   :  { %v329_v41 = vmul.u32 %v327_v26, %v1056_v28  ;;  %v106_v42 = vor.u32 8388608, %v1076_v62  ;;  %v139_v43 = vsel %vm133_vm8, %v126_v27, 920167782  ;;  %v143_v45 = vsel %vm133_vm8, %v129_v30, 1326507024 }
  0x92   :  { %v309_v46 = vmul.u32 %v305_v25, %v1061_v31  ;;  %v310_v47 = vshll.u32 %v307_v36, 16  ;;  %v311_v49 = vshrl.u32 %v307_v36, 16  ;;  %v328_v50 = vmul.u32 %v326_v34, %v1056_v28 }
  0x93   :  { %v330_v51 = vmul.u32 %v326_v34, %v1061_v31  ;;  %v332_v52 = vshll.u32 %v329_v41, 16  ;;  %v312_v53 = vshll.u32 %v308_v37, 16  ;;  %v313_v54 = vshrl.u32 %v308_v37, 16 }
  0x94   :  { %vm314_vm9 = vc.u32 %v306_v40, %v310_v47  ;;  %v316_v55 = vadd.s32 %v310_v47, %v306_v40  ;;  %v331_v57 = vmul.u32 %v327_v26, %v1061_v31  ;;  %v115_v63 = vshll.u32 %v966_v39, %v1080_v0 }
  0x95   :  { %v315_v56 = vsel %vm314_vm9, 1, %v963_v3  ;;  %v334_v58 = vshll.u32 %v330_v51, 16  ;;  %vm336_vm10 = vc.u32 %v328_v50, %v332_v52  ;;  %v338_v61 = vadd.s32 %v332_v52, %v328_v50 }
  0x96   :  { %v317_v59 = vadd.s32 %v315_v56, %v309_v46  ;;  %vm318_vm11 = vc.u32 %v316_v55, %v312_v53  ;;  %v337_v60 = vsel %vm336_vm10, 1, %v963_v3  ;;  %v116_v2 = vshrl.u32 %v968_v44, %v1091_v9 }
  0x97   :  { %v319_v28 = vsel %vm318_vm11, 1, %v963_v3  ;;  %v339_v62 = vadd.s32 %v337_v60, %v331_v57  ;;  %vm340_vm12 = vc.u32 %v338_v61, %v334_v58  ;;  %v118_v31 = vshll.u32 %v968_v44, %v1080_v0 }
  0x98   :  { %v321_v4 = vadd.s32 %v319_v28, %v317_v59  ;;  %v119_v6 = vshrl.u32 %v969_v48, %v1091_v9  ;;  %v341_v7 = vsel %vm340_vm12, 1, %v963_v3  ;;  %v1140_v10 = vor.u32 %v116_v2, %v115_v63 }
  0x99   :  { %v121_v12 = vshll.u32 %v969_v48, %v1080_v0  ;;  %v122_v14 = vshrl.u32 %v964_v33, %v1091_v9  ;;  %v333_v16 = vshrl.u32 %v329_v41, 16  ;;  %v343_v17 = vadd.s32 %v341_v7, %v339_v62 }
  0x9a   :  { %v322_v15 = vadd.s32 %v321_v4, %v311_v49  ;;  %v1146_v18 = vor.u32 %v119_v6, %v118_v31  ;;  %v335_v19 = vshrl.u32 %v330_v51, 16  ;;  %vm130_vm13 = vcmp.lt.s32.totalorder %v1088_v8, 1 }
  0x9b   :  { %v123_v44 = vor.u32 %v122_v14, %v121_v12  ;;  %vm132_vm14 = vcmp.lt.s32.totalorder %v1088_v8, 3  ;;  %v344_v23 = vadd.s32 %v343_v17, %v333_v16  ;;  %v1158_v0 = vadd.s32 %v338_v61, %v334_v58 }
  0x9c   :  { %v1150_v20 = vadd.s32 %v322_v15, %v313_v54  ;;  %v138_v48 = vsel %vm130_vm13, %v1140_v10, %v1146_v18  ;;  %v144_v33 = vsel %vm132_vm14, %v126_v27, %v143_v45  ;;  %v1165_v26 = vshll.u32 %v106_v42, 8 }
  0x9d   :  { %v140_v24 = vsel %vm132_vm14, %v123_v44, %v139_v43  ;;  %v142_v25 = vsel %vm130_vm13, %v1146_v18, %v123_v44  ;;  %v292_v30 = vsel %vm286_vm7, %v289_v35, %v291_v38  ;;  %v345_v34 = vadd.s32 %v344_v23, %v335_v19 }
  0x9e   :  { %vm131_vm15 = vcmp.lt.s32.totalorder %v1088_v8, 2  ;;  %vm348_vm0 = vc.u32 %v1150_v20, %v1158_v0  ;;  %v147_v37 = vand.u32 65535, %v1165_v26  ;;  %v148_v41 = vshrl.u32 %v1165_v26, 16 }
  0x9f   :  { %v141_v27 = vsel %vm131_vm15, %v138_v48, %v140_v24  ;;  %v145_v36 = vsel %vm131_vm15, %v142_v25, %v144_v33  ;;  %v349_v40 = vadd.s32 1, %v345_v34  ;;  %v346_v35 = vmul.u32 %v1052_v22, %v292_v30 }
  0xa0   :  { %v149_v42 = vand.u32 65535, %v145_v36  ;;  %v150_v29 = vshrl.u32 %v145_v36, 16  ;;  %v171_v38 = vand.u32 65535, %v141_v27  ;;  %v172_v43 = vshrl.u32 %v141_v27, 16 }
  0xa1   :  { %v350_v45 = vsel %vm348_vm0, %v349_v40, %v345_v34  ;;  %v135_v4 = vsel %vm133_vm8, %v123_v44, 2102212464  ;;  %v114_v16 = vshrl.u32 %v966_v39, %v1091_v9  ;;  %vm724_vm8 = vcmask 130048  }
  0xa2   :  { %v152_v46 = vmul.u32 %v150_v29, %v147_v37  ;;  %v153_v47 = vmul.u32 %v149_v42, %v148_v41  ;;  %v351_v49 = vadd.s32 %v350_v45, %v346_v35  ;;  %v174_v50 = vmul.u32 %v172_v43, %v147_v37 }
  0xa3   :  { %v151_v51 = vmul.u32 %v149_v42, %v147_v37  ;;  %v154_v54 = vmul.u32 %v150_v29, %v148_v41  ;;  %v175_v55 = vmul.u32 %v171_v38, %v148_v41  ;;  %v173_v59 = vmul.u32 %v171_v38, %v147_v37 }
  0xa4   :  { %v155_v52 = vshll.u32 %v152_v46, 16  ;;  %v352_v53 = vadd.s32 536870912, %v351_v49  ;;  %v177_v56 = vshll.u32 %v174_v50, 16  ;;  %v157_v57 = vshll.u32 %v153_v47, 16 }
  0xa5   :  { %v176_v61 = vmul.u32 %v172_v43, %v148_v41  ;;  %v179_v28 = vshll.u32 %v175_v55, 16  ;;  %v156_v7 = vshrl.u32 %v152_v46, 16  ;;  %v158_v19 = vshrl.u32 %v153_v47, 16 }
  0xa6   :  { %vm159_vm1 = vc.u32 %v151_v51, %v155_v52  ;;  %v161_v58 = vadd.s32 %v155_v52, %v151_v51  ;;  %v1179_v60 = vshrl.u32 %v352_v53, 30  ;;  %vm181_vm3 = vc.u32 %v173_v59, %v177_v56 }
  0xa7   :  { %v160_v22 = vsel %vm159_vm1, 1, %v963_v3  ;;  %v183_v63 = vadd.s32 %v177_v56, %v173_v59  ;;  %v182_v6 = vsel %vm181_vm3, 1, %v963_v3  ;;  %v178_v48 = vshrl.u32 %v174_v50, 16 }
  0xa8   :  { %v162_v62 = vadd.s32 %v160_v22, %v154_v54  ;;  %vm163_vm2 = vc.u32 %v161_v58, %v157_v57  ;;  %v354_v2 = vshll.u32 %v1179_v60, 30  ;;  %v184_v14 = vadd.s32 %v182_v6, %v176_v61 }
  0xa9   :  { %v164_v31 = vsel %vm163_vm2, 1, %v963_v3  ;;  %vm185_vm4 = vc.u32 %v183_v63, %v179_v28  ;;  %v134_v24 = vsel %vm130_vm13, %v114_v16, %v1140_v10  ;;  %v136_v25 = vsel %vm132_vm14, %v1146_v18, %v135_v4 }
  0xaa   :  { %v166_v12 = vadd.s32 %v164_v31, %v162_v62  ;;  %v355_v15 = vsub.s32 %v351_v49, %v354_v2  ;;  %v186_v17 = vsel %vm185_vm4, 1, %v963_v3  ;;  %v180_v34 = vshrl.u32 %v175_v55, 16 }
  0xab   :  { %v188_v33 = vadd.s32 %v186_v17, %v184_v14  ;;  %v187_v9 = vadd.s32 %v183_v63, %v179_v28  ;;  %v137_v36 = vsel %vm131_vm15, %v134_v24, %v136_v25  ;;  %v347_v18 = vadd.s32 %v1158_v0, %v1150_v20 }
  0xac   :  { %v167_v23 = vadd.s32 %v166_v12, %v156_v7  ;;  %vm356_vm5 = vcmp.lt.s32.totalorder %v355_v15, 0  ;;  %v357_v44 = vsub.s32 0, %v355_v15  ;;  %v191_v42 = vmul.u32 %v1165_v26, %v137_v36  ;;  %v716_v26 = vld [vmem:[%s1308_s4] sm:$0xff] }
  0xad   :  { %v189_v27 = vadd.s32 %v188_v33, %v178_v48  ;;  %936 = vmatmul.msk.f32.vlgmr.msra.gmra.mxu2 %vm724_vm8, %v716_v26  ;;  %vm255_vm10 = vcmp.lt.s32.totalorder %v1044_v11, 0  ;;  %v377_v22 = vsub.s32 4, %v1179_v60  ;;  %vm1212_vm11 = vcmp.le.f32.partialorder %v253_v13, 0.7853982 }
  0xae   :  { %v168_v30 = vadd.s32 %v167_v23, %v158_v19  ;;  %v358_v39 = vsel %vm356_vm5, %v357_v44, %v355_v15  ;;  %vm100_vm13 = vcmp.lt.s32.totalorder %v1050_v21, 0  ;;  %vm1229_vm0 = vcmp.le.f32.partialorder %v98_v32, 0.7853982 }
  0xaf   :  { %v359_v3 = vclz %v358_v39  ;;  %v190_v37 = vadd.s32 %v189_v27, %v180_v34  ;;  %v378_v4 = vsel %vm255_vm10, %v377_v22, %v1179_v60  ;;  %vm396_vm5 = vweird.f32 %v1044_v11 }
  0xb0   :  { %vm193_vm6 = vc.u32 %v168_v30, %v187_v9  ;;  %v192_v12 = vadd.s32 %v187_v9, %v168_v30  ;;  %v380_v19 = vsel %vm1212_vm11, 0, %v378_v4  ;;  %v717_v30 = vld [vmem:[%s1308_s4 + $0x8] sm:$0xff] }
  0xb1   :  { %v924_v40 = vadd.s32 4294967294, %v359_v3  ;;  %v194_v41 = vadd.s32 1, %v190_v37  ;;  %v397_v27 = vadd.s32 3, %v380_v19  ;;  %v706_v36 = vand.u32 3, %v380_v19 }
  0xb3   :  { %vm925_vm7 = vcmp.lt.s32.totalorder %v924_v40, 0  ;;  %v195_v10 = vsel %vm193_vm6, %v194_v41, %v190_v37  ;;  %vm707_vm14 = vcmp.lt.s32.totalorder %v706_v36, 2  ;;  %vm708_vm15 = vcmp.eq.s32.totalorder %v706_v36, 0 }
  0xb4   :  { %v362_v29 = vsel %vm925_vm7, 0, %v924_v40  ;;  %v196_v35 = vadd.s32 %v195_v10, %v191_v42  ;;  %v398_v10 = vand.u32 3, %v397_v27  ;;  %vm711_vm3 = vcmp.eq.s32.totalorder %v706_v36, 2  ;;  %v31_v27 = vld [vmem:[%s1304_s2 + $0x10] sm:$0xff]  ;;  %v723_v36 = vld [vmem:[%s1310_s5 + $0x18] sm:$0xff] }
  0xb5   :  { %v363_v38 = vsub.s32 32, %v362_v29  ;;  %v367_v43 = vsub.s32 4294967266, %v362_v29  ;;  %v364_v46 = vshll.u32 %v355_v15, %v362_v29  ;;  %937 = vmatmul.msk.f32.gmra.mxu2 %vm724_vm8, %v717_v30  ;;  %v809_v30 = vld [vmem:[%s1309_s6 + $0x10] sm:$0xff] }
  0xb6   :  { %v197_v45 = vadd.s32 536870912, %v196_v35  ;;  %vm399_vm1 = vcmp.lt.s32.totalorder %v398_v10, 2  ;;  %vm403_vm2 = vcmp.eq.s32.totalorder %v398_v10, 2  ;;  %vm400_vm4 = vcmp.eq.s32.totalorder %v398_v10, 0 }
  0xb7   :  { %v365_v47 = vshrl.u32 %v347_v18, %v363_v38  ;;  %v368_v8 = vadd.s32 127, %v367_v43 }
  0xb8   :  { %v1201_v49 = vshrl.u32 %v197_v45, 30 }
  0xb9   :  { %v366_v50 = vor.u32 %v365_v47, %v364_v46  ;;  %v369_v51 = vshll.u32 %v368_v8, 23 }
  0xba   :  { %v199_v52 = vshll.u32 %v1201_v49, 30  ;;  %v222_v8 = vsub.s32 4, %v1201_v49 }
  0xbb   :  { %v370_v53 = vor.u32 4788187, %v369_v51  ;;  %v373_v54 = vcvt.s32.f32 %v366_v50  ;;  %v718_v50 = vld [vmem:[%s1308_s4 + $0x10] sm:$0xff] }
  0xbc   :  { %v200_v20 = vsub.s32 %v196_v35, %v199_v52 }
  0xbd   :  { %v371_v0 = vand.u32 2147483647, %v370_v53  ;;  %938 = vmatmul.msk.f32.gmra.mxu2 %vm724_vm8, %v718_v50 }
  0xbe   :  { %vm201_vm9 = vcmp.lt.s32.totalorder %v200_v20, 0  ;;  %v202_v55 = vsub.s32 0, %v200_v20 }
  0xbf   :  { %v374_v56 = vmul.f32 %v373_v54, %v371_v0 }
  0xc0   :  { %v203_v57 = vsel %vm201_vm9, %v202_v55, %v200_v20 }
  0xc1   :  { %v375_v58 = vxor.u32 2147483648, %v374_v56  ;;  %v204_v59 = vclz %v203_v57 }
  0xc3   :  { %v376_v28 = vsel %vm255_vm10, %v375_v58, %v374_v56  ;;  %v921_v62 = vadd.s32 4294967294, %v204_v59  ;;  %v223_v58 = vsel %vm100_vm13, %v222_v8, %v1201_v49 }
  0xc4   :  { %v379_v63 = vsel %vm1212_vm11, %v1044_v11, %v376_v28  ;;  %v225_v61 = vsel %vm1229_vm0, 0, %v223_v58 }
  0xc5   :  { %v381_v2 = vmul.f32 %v379_v63, %v379_v63  ;;  %vm922_vm12 = vcmp.lt.s32.totalorder %v921_v62, 0  ;;  %v242_v49 = vadd.s32 3, %v225_v61 }
  0xc6   :  { %v207_v31 = vsel %vm922_vm12, 0, %v921_v62  ;;  %v719_v62 = vld [vmem:[%s1308_s4 + $0x18] sm:$0xff] }
  0xc7   :  { %v382_v6 = vmul.f32 -0.001358992, %v381_v2  ;;  %v389_v7 = vmul.f32 -0.00019511016, %v381_v2  ;;  %v208_v14 = vsub.s32 32, %v207_v31  ;;  %v212_v15 = vsub.s32 4294967266, %v207_v31  ;;  %939 = vmatmul.msk.f32.gmra.mxu2 %vm724_vm8, %v719_v62 }
  0xc8   :  { %v209_v23 = vshll.u32 %v200_v20, %v207_v31 }
  0xc9   :  { %v383_v13 = vadd.f32 0.041655596, %v382_v6  ;;  %v390_v16 = vadd.f32 0.008332121, %v389_v7  ;;  %v210_v17 = vshrl.u32 %v192_v12, %v208_v14  ;;  %v213_v48 = vadd.s32 127, %v212_v15 }
  0xca   :  { %v552_v14 = vand.u32 3, %v225_v61  ;;  %v243_v15 = vand.u32 3, %v242_v49 }
  0xcb   :  { %v384_v33 = vmul.f32 %v383_v13, %v381_v2  ;;  %v391_v44 = vmul.f32 %v390_v16, %v381_v2  ;;  %v211_v24 = vor.u32 %v210_v17, %v209_v23  ;;  %v214_v25 = vshll.u32 %v213_v48, 23  ;;  %v32_v17 = vld [vmem:[%s1304_s2 + $0x18] sm:$0xff] }
  0xcc   :  { %vm553_vm6 = vcmp.lt.s32.totalorder %v552_v14, 2  ;;  %vm554_vm7 = vcmp.eq.s32.totalorder %v552_v14, 0  ;;  %vm244_vm9 = vcmp.lt.s32.totalorder %v243_v15, 2  ;;  %vm245_vm10 = vcmp.eq.s32.totalorder %v243_v15, 0 }
  0xcd   :  { %v385_v34 = vadd.f32 -0.4999988, %v384_v33  ;;  %v392_v60 = vadd.f32 -0.16666654, %v391_v44  ;;  %v215_v39 = vor.u32 4788187, %v214_v25  ;;  %v218_v40 = vcvt.s32.f32 %v211_v24 }
  0xce   :  { %vm248_vm11 = vcmp.eq.s32.totalorder %v243_v15, 2  ;;  %vm557_vm12 = vcmp.eq.s32.totalorder %v552_v14, 2  ;;  %v807_v24 = vld [vmem:[%s1309_s6] sm:$0xff] }
  0xcf   :  { %v386_v9 = vmul.f32 %v385_v34, %v381_v2  ;;  %v393_v3 = vmul.f32 %v392_v60, %v381_v2  ;;  %v216_v37 = vand.u32 2147483647, %v215_v39  ;;  %v720_v25 = vld [vmem:[%s1310_s5] sm:$0xff]  ;;  %v721_v39 = vld [vmem:[%s1310_s5 + $0x8] sm:$0xff] }
  0xd1   :  { %v387_v41 = vadd.f32 1.0, %v386_v9  ;;  %v394_v42 = vadd.f32 1.0, %v393_v3  ;;  %v219_v29 = vmul.f32 %v218_v40, %v216_v37  ;;  %v722_v9 = vld [vmem:[%s1310_s5 + $0x10] sm:$0xff]  ;;  %v810_v3 = vld [vmem:[%s1309_s6 + $0x18] sm:$0xff] }
  0xd3   :  { %v395_v35 = vmul.f32 %v394_v42, %v379_v63  ;;  %v404_v18 = vxor.u32 2147483648, %v387_v41  ;;  %v220_v43 = vxor.u32 2147483648, %v219_v29  ;;  %v970_v63 = vmov 1  }
  0xd4   :  { %959 = vset.pattern.permute.xlu1 %v970_v63  ;;  %958 = vset.pattern.permute.xlu0 %v970_v63 }
  0xd5   :  { %v401_v45 = vxor.u32 2147483648, %v395_v35  ;;  %v405_v46 = vsel %vm403_vm2, %v404_v18, %v395_v35  ;;  %v221_v47 = vsel %vm100_vm13, %v220_v43, %v219_v29  ;;  %v713_v26 = vsel %vm711_vm3, %v404_v18, %v395_v35  ;;  %857 = vperm.xlu1 %959, %v1034_v5   ;;  %861 = vperm.xlu0 %958, %v1020_v1   ;;  %v33_v29 = vld [vmem:[%s1304_s2] sm:$0x3f] }
  0xd6   :  { %v224_v52 = vsel %vm1229_vm0, %v1050_v21, %v221_v47  ;;  %957 = vset.pattern.permute.xlu2 %v970_v63  ;;  %vm241_vm13 = vweird.f32 %v1050_v21  ;;  %v808_v21 = vld [vmem:[%s1309_s6 + $0x8] sm:$0xff]  ;;  %v971_v35 = vmov 2  }
  0xd7   :  { %v402_v32 = vsel %vm400_vm4, %v387_v41, %v401_v45  ;;  %v710_v51 = vsel %vm708_vm15, %v387_v41, %v401_v45  ;;  %v226_v0 = vmul.f32 %v224_v52, %v224_v52  ;;  %871 = vperm.xlu2 %957, %v32_v17  }
  0xd8   :  { %v406_v53 = vsel %vm399_vm1, %v402_v32, %v405_v46  ;;  %v714_v20 = vsel %vm707_vm14, %v710_v51, %v713_v26 }
  0xd9   :  { %v407_v54 = vsel %vm396_vm5, nan, %v406_v53  ;;  %v715_v55 = vsel %vm396_vm5, nan, %v714_v20  ;;  %v227_v56 = vmul.f32 -0.001358992, %v226_v0  ;;  %v234_v57 = vmul.f32 -0.00019511016, %v226_v0 }
  0xda   :  { %751 = vmatpush.msra.mxu1 %v407_v54  ;;  %837 = vmatpush.msra.mxu3 %v715_v55 }
  0xdb   :  { %v228_v59 = vadd.f32 0.041655596, %v227_v56  ;;  %v235_v22 = vadd.f32 0.008332121, %v234_v57 }
  0xdd   :  { %v229_v11 = vmul.f32 %v228_v59, %v226_v0  ;;  %v236_v28 = vmul.f32 %v235_v22, %v226_v0  ;;  %961 = vset.pattern.permute.xlu0 %v971_v35 }
  0xdf   :  { %v230_v2 = vadd.f32 -0.4999988, %v229_v11  ;;  %v237_v4 = vadd.f32 -0.16666654, %v236_v28  ;;  %866 = vperm.xlu2 %957, %v31_v27  }
  0xe1   :  { %v231_v31 = vmul.f32 %v230_v2, %v226_v0  ;;  %v238_v6 = vmul.f32 %v237_v4, %v226_v0  ;;  %v882_v2 = vld [vmem:[%s1311_s7] sm:$0x3f] }
  0xe3   :  { %v232_v7 = vadd.f32 1.0, %v231_v31  ;;  %v239_v12 = vadd.f32 1.0, %v238_v6 }
  0xe5   :  { %v240_v13 = vmul.f32 %v239_v12, %v224_v52  ;;  %v249_v16 = vxor.u32 2147483648, %v232_v7 }
  0xe7   :  { %v246_v19 = vxor.u32 2147483648, %v240_v13  ;;  %v250_v5 = vsel %vm248_vm11, %v249_v16, %v240_v13  ;;  %v559_v48 = vsel %vm557_vm12, %v249_v16, %v240_v13  ;;  %960 = vset.pattern.permute.xlu2 %v971_v35 }
  0xe8   :  { %885 = vperm.xlu2 %960, %v33_v29  }
  0xe9   :  { %v247_v1 = vsel %vm245_vm10, %v232_v7, %v246_v19  ;;  %v556_v23 = vsel %vm554_vm7, %v232_v7, %v246_v19 }
  0xea   :  { %v251_v33 = vsel %vm244_vm9, %v247_v1, %v250_v5  ;;  %v560_v44 = vsel %vm553_vm6, %v556_v23, %v559_v48 }
  0xeb   :  { %v252_v34 = vsel %vm241_vm13, nan, %v251_v33  ;;  %v561_v60 = vsel %vm241_vm13, nan, %v560_v44 }
  0xec   :  { %752 = vmatpush.msra.mxu1 %v252_v34  ;;  %838 = vmatpush.msra.mxu3 %v561_v60 }
  0xed   :  { %940 = vmatmul.msk.f32.vlgmr.msra.gmra.mxu3 %vm724_vm8, %v807_v24  ;;  %932 = vmatmul.msk.f32.vlgmr.msra.gmra.mxu1 %vm724_vm8, %v720_v25 }
  0xf5   :  { %941 = vmatmul.msk.f32.gmra.mxu3 %vm724_vm8, %v808_v21  ;;  %933 = vmatmul.msk.f32.gmra.mxu1 %vm724_vm8, %v721_v39 }
  0xfd   :  { %942 = vmatmul.msk.f32.gmra.mxu3 %vm724_vm8, %v809_v30  ;;  %934 = vmatmul.msk.f32.gmra.mxu1 %vm724_vm8, %v722_v9 }
 0x105   :  { %943 = vmatmul.msk.f32.gmra.mxu3 %vm724_vm8, %v810_v3  ;;  %935 = vmatmul.msk.f32.gmra.mxu1 %vm724_vm8, %v723_v36  ;;  %vm888_vm8 = vcmask 261120  }
 0x130   :  { %v795_v37 = vpop.f32.mrf.mxu2 }
 0x131   :  { %v872_v45 = vpop.permute.xlu2 %871 }
 0x138   :  { %v798_v41 = vpop.f32.mrf.mxu2 }
 0x139   :  { %v867_v53 = vpop.permute.xlu2 %866 }
 0x140   :  { %v801_v38 = vpop.f32.mrf.mxu2 }
 0x142   :  { %v886_v4 = vpop.permute.xlu2 %885 }
 0x147   :  { %v862_v55 = vpop.permute.xlu0 %861  ;;  %v858_v59 = vpop.permute.xlu1 %857 }
 0x14a   :  { %v804_v8 = vpop.f32.mrf.mxu2 }
 0x16a   :  { %v754_v40 = vpop.f32.mrf.mxu1 }
 0x16b   :  { %v796_v26 = vadd.f32 %v795_v37, %v754_v40 }
 0x170   :  { %v840_v42 = vpop.f32.mrf.mxu3 }
 0x171   :  { %v852_v56 = vadd.f32 %v840_v42, %v796_v26 }
 0x172   :  { %v757_v10 = vpop.f32.mrf.mxu1 }
 0x173   :  { %v799_v32 = vadd.f32 %v798_v41, %v757_v10  ;;  %v874_v11 = vadd.f32 %v858_v59, %v852_v56 }
 0x175   :  { %v878_v63 = vmax.f32 %v874_v11, 0.0 }
 0x178   :  { %v843_v18 = vpop.f32.mrf.mxu3 }
 0x179   :  { %v853_v0 = vadd.f32 %v843_v18, %v799_v32 }
 0x17a   :  { %v760_v43 = vpop.f32.mrf.mxu1 }
 0x17b   :  { %v802_v50 = vadd.f32 %v801_v38, %v760_v43  ;;  %v875_v22 = vadd.f32 %v862_v55, %v853_v0 }
 0x17d   :  { %v879_v62 = vmax.f32 %v875_v22, 0.0 }
 0x180   :  { %v846_v46 = vpop.f32.mrf.mxu3 }
 0x181   :  { %v854_v52 = vadd.f32 %v846_v46, %v802_v50 }
 0x182   :  { %v763_v47 = vpop.f32.mrf.mxu1 }
 0x183   :  { %v805_v51 = vadd.f32 %v804_v8, %v763_v47  ;;  %v876_v57 = vadd.f32 %v867_v53, %v854_v52 }
 0x185   :  { %v880_v28 = vmax.f32 %v876_v57, 0.0 }
 0x188   :  { %v849_v20 = vpop.f32.mrf.mxu3 }
 0x189   :  { %v855_v54 = vadd.f32 %v849_v20, %v805_v51 }
 0x18b   :  { %v877_v58 = vadd.f32 %v872_v45, %v855_v54 }
 0x18d   :  { %v881_v61 = vmax.f32 %v877_v58, 0.0 }
 0x18f   :  { %904 = vmatpush.msrb.mxu0 %v881_v61 }
 0x191   :  { %905 = vmatpush.msrb.mxu0 %v880_v28 }
 0x193   :  { %906 = vmatpush.msrb.mxu0 %v879_v62 }
 0x195   :  { %907 = vmatpush.msrb.mxu0 %v878_v63 }
 0x196   :  { %944 = vmatmul.msk.f32.vlgmr.msrb.gmra.mxu0 %vm888_vm8, %v882_v2 }
 0x213   :  { %v909_v49 = vpop.f32.mrf.mxu0 }
 0x214   :  { %v910_v31 = vadd.f32 %v909_v49, %v886_v4 }
 0x216   :  { %912 = vst [vmem:[%s1312_s8] sm:$0x3f] %v910_v31 }

</bundles_post_ra>
